<compile_context>
chip_gen: v7x
topology: tpu7x:2x2x1
jax: 0.10.0
libtpu: 0.0.40
codegen_flags: <defaults>
</compile_context>

<pallas_src>
import functools

import jax
import jax.numpy as jnp
from jax import lax
from jax.experimental import pallas as pl
from jax.experimental.pallas import tpu as pltpu


def _coembed_kernel(drug_ref, target_ref, wd_ref, bd_ref, wt_ref, bt_ref,
                    out_ref, *, mm_dtype):
    drug = drug_ref[...]
    target = target_ref[...]
    if drug.dtype != mm_dtype:
        drug = drug.astype(mm_dtype)       # VPU cast, hidden under the MXU
    if target.dtype != mm_dtype:
        target = target.astype(mm_dtype)

    # Projections + ReLU: two MXU matmuls with f32 accumulation.
    dp = jnp.dot(drug, wd_ref[...], preferred_element_type=jnp.float32)
    dp = jnp.maximum(dp + bd_ref[...], 0.0)                        # (TB, L) f32
    tp = jnp.dot(target, wt_ref[...], preferred_element_type=jnp.float32)
    tp = jnp.maximum(tp + bt_ref[...], 0.0)                        # (TB, L) f32

    # Cosine similarity (torch.nn.CosineSimilarity, dim=1, eps=1e-8) + sigmoid.
    # For x >= 0: max(sqrt(x), eps) == sqrt(max(x, eps^2)), and the two rsqrt's
    # fuse into a single EUP push on the product of the clamped squared norms.
    eps2 = jnp.float32(1e-16)
    num = jnp.sum(dp * tp, axis=-1, keepdims=True)                 # (TB, 1)
    d2 = jnp.sum(dp * dp, axis=-1, keepdims=True)                  # (TB, 1)
    t2 = jnp.sum(tp * tp, axis=-1, keepdims=True)                  # (TB, 1)
    cos = num * lax.rsqrt(jnp.maximum(d2, eps2) * jnp.maximum(t2, eps2))
    # (TB,1) -> (1,TB): XLU relayout hidden under the MXU; lane-dense store.
    out_ref[...] = jnp.transpose(jax.nn.sigmoid(cos))              # (1, TB) f32


def _round_up(x, m):
    return ((x + m - 1) // m) * m


def _vmem_capacity_bytes():
    try:
        return int(pltpu.get_tpu_info().vmem_capacity_bytes)
    except Exception:
        return 64 * 1024 * 1024  # conservative default (v7x per-TC VMEM)


def _pick_block_b(b_rows):
    """Batch tile: <=512 rows; a multiple of 128 whenever the batch is tiled
    (keeps the MXU full on v5e and the lane-dense output blocks legal) and
    >=2 grid steps for B > 256 so both v7x TensorCores get work; otherwise a
    single tile rounded to 16 rows (bf16 sublane packing)."""
    if b_rows > 256:
        return min(512, _round_up(pl.cdiv(b_rows, 2), 128))
    return max(16, _round_up(b_rows, 16))


def _pallas_forward(drug, target, wd_t, bd, wt_t, bt, *, block_b, mm_dtype,
                    vmem_limit, cost, resident_weights):
    b_pad, Fd = drug.shape
    Ft = target.shape[1]
    L = wd_t.shape[1]

    def const_spec(shape):
        idx = lambda i: (0, 0)
        if resident_weights:
            # Constant index_map blocks never re-fetch; one buffer is enough.
            return pl.BlockSpec(shape, idx, pipeline_mode=pl.Buffered(1))
        return pl.BlockSpec(shape, idx)

    return pl.pallas_call(
        functools.partial(_coembed_kernel, mm_dtype=mm_dtype),
        out_shape=jax.ShapeDtypeStruct((1, b_pad), jnp.float32),
        grid_spec=pltpu.PrefetchScalarGridSpec(
            num_scalar_prefetch=0,
            grid=(b_pad // block_b,),
            in_specs=[
                pl.BlockSpec((block_b, Fd), lambda i: (i, 0)),  # drug tile (pipelined)
                pl.BlockSpec((block_b, Ft), lambda i: (i, 0)),  # target tile (pipelined)
                const_spec((Fd, L)),                            # Wd^T  (VMEM-resident)
                const_spec((1, L)),                             # bd    (VMEM-resident)
                const_spec((Ft, L)),                            # Wt^T  (VMEM-resident)
                const_spec((1, L)),                             # bt    (VMEM-resident)
            ],
            out_specs=pl.BlockSpec((1, block_b), lambda i: (0, i)),  # lane-dense row
        ),
        compiler_params=pltpu.CompilerParams(
            dimension_semantics=("parallel",),     # megacore sharding on v7x
            vmem_limit_bytes=vmem_limit,           # explicit, generation-aware
        ),
        cost_estimate=cost,
    )(drug, target, wd_t, bd, wt_t, bt)


def simple_coembedding_sigmoid(drug, target, wd_t, bd, wt_t, bt,
                               *, block_b=None, use_bf16=True):
    """drug: (B, Fd), target: (B, Ft), wd_t: (Fd, L), wt_t: (Ft, L), biases (1, L)."""
    B, Fd = drug.shape
    Ft = target.shape[1]
    L = wd_t.shape[1]

    if block_b is None:
        block_b = _pick_block_b(B)
    b_pad = pl.cdiv(B, block_b) * block_b
    if b_pad != B:  # pad the batch; padded rows are discarded after the call
        drug = jnp.pad(drug, ((0, b_pad - B), (0, 0)))
        target = jnp.pad(target, ((0, b_pad - B), (0, 0)))

    # Activations keep their HBM dtype (f32): the bf16 cast is done inside the
    # kernel (hidden under the MXU) instead of as a separate HBM pass here.
    mm_dtype = jnp.bfloat16 if use_bf16 else jnp.float32
    wd_t = wd_t.astype(mm_dtype)   # weights: cast once, small + VMEM-resident
    wt_t = wt_t.astype(mm_dtype)
    bd = bd.astype(jnp.float32).reshape(1, L)
    bt = bt.astype(jnp.float32).reshape(1, L)

    w_bytes = jnp.dtype(mm_dtype).itemsize
    cost = pl.CostEstimate(
        flops=2 * b_pad * (Fd + Ft) * L + 6 * b_pad * L,
        transcendentals=2 * b_pad,                       # rsqrt + sigmoid per row
        bytes_accessed=(b_pad * (Fd + Ft) * drug.dtype.itemsize
                        + (Fd + Ft) * L * w_bytes + 2 * L * 4 + b_pad * 4),
    )
    vmem_limit = int(_vmem_capacity_bytes() * 3 // 4)

    kwargs = dict(block_b=block_b, mm_dtype=mm_dtype,
                  vmem_limit=vmem_limit, cost=cost)
    try:
        out = _pallas_forward(drug, target, wd_t, bd, wt_t, bt,
                              resident_weights=True, **kwargs)
    except Exception:
        # Fallback if this JAX build rejects pipeline_mode=pl.Buffered(1):
        # identical semantics, weights just get the default double buffer.
        out = _pallas_forward(drug, target, wd_t, bd, wt_t, bt,
                              resident_weights=False, **kwargs)
    return out[0, :B]  # .squeeze() -> (B,)


def _xavier_normal(key, out_features, in_features):
    # torch.nn.init.xavier_normal_ on a (out, in) Linear weight.
    std = jnp.sqrt(2.0 / (in_features + out_features))
    return jax.random.normal(key, (out_features, in_features), jnp.float32) * std


def _linear_bias(key, in_features, out_features):
    # torch default Linear bias init: U(-1/sqrt(in), 1/sqrt(in)).
    bound = 1.0 / jnp.sqrt(jnp.float32(in_features))
    return jax.random.uniform(key, (1, out_features), jnp.float32, -bound, bound)


if __name__ == "__main__":
    # Small shapes consistent with the module (defaults are 2048/1024/1024).
    batch = 8
    drug_shape = 256
    target_shape = 128
    latent = 128

    key = jax.random.PRNGKey(0)
    k_drug, k_target, k_wd, k_bd, k_wt, k_bt = jax.random.split(key, 6)

    drug = jax.random.normal(k_drug, (batch, drug_shape), jnp.float32)
    target = jax.random.normal(k_target, (batch, target_shape), jnp.float32)

    # Parameters (deterministic init; passed pre-transposed to the kernel).
    Wd = _xavier_normal(k_wd, latent, drug_shape)     # (L, Fd)  torch layout
    Wt = _xavier_normal(k_wt, latent, target_shape)   # (L, Ft)
    bd = _linear_bias(k_bd, drug_shape, latent)       # (1, L)
    bt = _linear_bias(k_bt, target_shape, latent)     # (1, L)

    out = simple_coembedding_sigmoid(drug, target, Wd.T, bd, Wt.T, bt)
    out = jax.block_until_ready(out)

    # Pure-JAX references: one mirroring the kernel's bf16-matmul numerics
    # (tight check) and one in full f32 (loose check of overall semantics).
    def ref_fwd(mm_dtype):
        dp = jnp.maximum(
            jnp.dot(drug.astype(mm_dtype), Wd.T.astype(mm_dtype),
                    preferred_element_type=jnp.float32) + bd, 0.0)
        tp = jnp.maximum(
            jnp.dot(target.astype(mm_dtype), Wt.T.astype(mm_dtype),
                    preferred_element_type=jnp.float32) + bt, 0.0)
        eps = 1e-8
        cos = jnp.sum(dp * tp, -1) / (
            jnp.maximum(jnp.linalg.norm(dp, axis=-1), eps)
            * jnp.maximum(jnp.linalg.norm(tp, axis=-1), eps))
        return jax.nn.sigmoid(cos)

    ref_bf16 = ref_fwd(jnp.bfloat16)
    ref_f32 = ref_fwd(jnp.float32)

    assert out.shape == (batch,)
    assert jnp.allclose(out, ref_bf16, atol=2e-3, rtol=2e-3)
    assert jnp.allclose(out, ref_f32, atol=3e-2, rtol=3e-2)

    print("KERNEL_OK")
</pallas_src>

<mosaic_0001>
module attributes {stable_mosaic.version = 11 : i64} {
  func.func @_coembed_kernel(%arg0: i32, %arg1: memref<16x256xf32, #tpu.memory_space<vmem>>, %arg2: memref<16x128xf32, #tpu.memory_space<vmem>>, %arg3: memref<256x128xbf16, #tpu.memory_space<vmem>>, %arg4: memref<1x128xf32, #tpu.memory_space<vmem>>, %arg5: memref<128x128xbf16, #tpu.memory_space<vmem>>, %arg6: memref<1x128xf32, #tpu.memory_space<vmem>>, %arg7: memref<1x16xf32, #tpu.memory_space<vmem>>) attributes {dimension_semantics = [#tpu.dimension_semantics<parallel>], iteration_bounds = array<i64: 1>, scalar_prefetch = 0 : i64, scratch_operands = 0 : i64, tpu.core_type = #tpu.core_type<tc>, window_params = [{transform_indices = @transform_0, window_bounds = array<i64: 16, 256>}, {transform_indices = @transform_1, window_bounds = array<i64: 16, 128>}, {pipeline_mode = #tpu.pipeline_mode<synchronous>, transform_indices = @transform_2, window_bounds = array<i64: 256, 128>}, {pipeline_mode = #tpu.pipeline_mode<synchronous>, transform_indices = @transform_3, window_bounds = array<i64: 1, 128>}, {pipeline_mode = #tpu.pipeline_mode<synchronous>, transform_indices = @transform_4, window_bounds = array<i64: 128, 128>}, {pipeline_mode = #tpu.pipeline_mode<synchronous>, transform_indices = @transform_5, window_bounds = array<i64: 1, 128>}, {transform_indices = @transform_6, window_bounds = array<i64: 1, 16>}]} {
    %c0 = arith.constant 0 : index
    %c0_0 = arith.constant 0 : index
    %0 = vector.load %arg1[%c0, %c0_0] : memref<16x256xf32, #tpu.memory_space<vmem>>, vector<16x256xf32>
    %c0_1 = arith.constant 0 : index
    %c0_2 = arith.constant 0 : index
    %1 = vector.load %arg2[%c0_1, %c0_2] : memref<16x128xf32, #tpu.memory_space<vmem>>, vector<16x128xf32>
    %2 = arith.truncf %0 : vector<16x256xf32> to vector<16x256xbf16>
    %3 = arith.truncf %1 : vector<16x128xf32> to vector<16x128xbf16>
    %c0_3 = arith.constant 0 : index
    %c0_4 = arith.constant 0 : index
    %4 = vector.load %arg3[%c0_3, %c0_4] : memref<256x128xbf16, #tpu.memory_space<vmem>>, vector<256x128xbf16>
    %cst = arith.constant dense<0.000000e+00> : vector<16x128xf32>
    %5 = tpu.matmul %2, %4, %cst {dimension_numbers = #tpu.dot_dimension_numbers<[1], [0], [0], [1], [0, 0, 1, 1], [], []>} : vector<16x256xbf16>, vector<256x128xbf16>, vector<16x128xf32> -> vector<16x128xf32>
    %c0_5 = arith.constant 0 : index
    %c0_6 = arith.constant 0 : index
    %6 = vector.load %arg4[%c0_5, %c0_6] : memref<1x128xf32, #tpu.memory_space<vmem>>, vector<1x128xf32>
    %7 = vector.broadcast %6 : vector<1x128xf32> to vector<16x128xf32>
    %8 = arith.addf %5, %7 : vector<16x128xf32>
    %cst_7 = arith.constant 0.000000e+00 : f32
    %9 = vector.broadcast %cst_7 : f32 to vector<16x128xf32>
    %10 = arith.maximumf %8, %9 : vector<16x128xf32>
    %c0_8 = arith.constant 0 : index
    %c0_9 = arith.constant 0 : index
    %11 = vector.load %arg5[%c0_8, %c0_9] : memref<128x128xbf16, #tpu.memory_space<vmem>>, vector<128x128xbf16>
    %cst_10 = arith.constant dense<0.000000e+00> : vector<16x128xf32>
    %12 = tpu.matmul %3, %11, %cst_10 {dimension_numbers = #tpu.dot_dimension_numbers<[1], [0], [0], [1], [0, 0, 1, 1], [], []>} : vector<16x128xbf16>, vector<128x128xbf16>, vector<16x128xf32> -> vector<16x128xf32>
    %c0_11 = arith.constant 0 : index
    %c0_12 = arith.constant 0 : index
    %13 = vector.load %arg6[%c0_11, %c0_12] : memref<1x128xf32, #tpu.memory_space<vmem>>, vector<1x128xf32>
    %14 = vector.broadcast %13 : vector<1x128xf32> to vector<16x128xf32>
    %15 = arith.addf %12, %14 : vector<16x128xf32>
    %cst_13 = arith.constant 0.000000e+00 : f32
    %16 = vector.broadcast %cst_13 : f32 to vector<16x128xf32>
    %17 = arith.maximumf %15, %16 : vector<16x128xf32>
    %18 = arith.mulf %10, %17 : vector<16x128xf32>
    %cst_14 = arith.constant dense<0.000000e+00> : vector<16xf32>
    %19 = vector.multi_reduction <add>, %18, %cst_14 [1] : vector<16x128xf32> to vector<16xf32>
    %20 = vector.shape_cast %19 : vector<16xf32> to vector<16x1xf32>
    %21 = arith.mulf %10, %10 : vector<16x128xf32>
    %cst_15 = arith.constant dense<0.000000e+00> : vector<16xf32>
    %22 = vector.multi_reduction <add>, %21, %cst_15 [1] : vector<16x128xf32> to vector<16xf32>
    %23 = vector.shape_cast %22 : vector<16xf32> to vector<16x1xf32>
    %24 = arith.mulf %17, %17 : vector<16x128xf32>
    %cst_16 = arith.constant dense<0.000000e+00> : vector<16xf32>
    %25 = vector.multi_reduction <add>, %24, %cst_16 [1] : vector<16x128xf32> to vector<16xf32>
    %26 = vector.shape_cast %25 : vector<16xf32> to vector<16x1xf32>
    %cst_17 = arith.constant 1.000000e-16 : f32
    %27 = vector.broadcast %cst_17 : f32 to vector<16x1xf32>
    %28 = arith.maximumf %23, %27 : vector<16x1xf32>
    %cst_18 = arith.constant 1.000000e-16 : f32
    %29 = vector.broadcast %cst_18 : f32 to vector<16x1xf32>
    %30 = arith.maximumf %26, %29 : vector<16x1xf32>
    %31 = arith.mulf %28, %30 : vector<16x1xf32>
    %32 = math.rsqrt %31 : vector<16x1xf32>
    %33 = arith.mulf %20, %32 : vector<16x1xf32>
    %34 = arith.negf %33 : vector<16x1xf32>
    %35 = math.exp %34 : vector<16x1xf32>
    %cst_19 = arith.constant 1.000000e+00 : f32
    %36 = vector.broadcast %cst_19 : f32 to vector<16x1xf32>
    %37 = arith.addf %36, %35 : vector<16x1xf32>
    %38 = arith.divf %36, %37 : vector<16x1xf32>
    %39 = tpu.transpose %38, [1, 0] : vector<16x1xf32> -> vector<1x16xf32>
    %c0_20 = arith.constant 0 : index
    %c0_21 = arith.constant 0 : index
    %40 = vector.load %arg7[%c0_20, %c0_21] : memref<1x16xf32, #tpu.memory_space<vmem>>, vector<1x16xf32>
    tpu.vector_store %arg7[%c0_20, %c0_21], %39 {strides = array<i32>} : memref<1x16xf32, #tpu.memory_space<vmem>>, vector<1x16xf32>,
    return
  }
  func.func @transform_0(%arg0: i32) -> (i32, i32) {
    %c0_i32 = arith.constant 0 : i32
    %c0_i32_0 = arith.constant 0 : i32
    return %arg0, %c0_i32 : i32, i32
  }
  func.func @transform_1(%arg0: i32) -> (i32, i32) {
    %c0_i32 = arith.constant 0 : i32
    %c0_i32_0 = arith.constant 0 : i32
    return %arg0, %c0_i32 : i32, i32
  }
  func.func @transform_2(%arg0: i32) -> (i32, i32) {
    %c0_i32 = arith.constant 0 : i32
    %c0_i32_0 = arith.constant 0 : i32
    %c0_i32_1 = arith.constant 0 : i32
    return %c0_i32, %c0_i32_0 : i32, i32
  }
  func.func @transform_3(%arg0: i32) -> (i32, i32) {
    %c0_i32 = arith.constant 0 : i32
    %c0_i32_0 = arith.constant 0 : i32
    %c0_i32_1 = arith.constant 0 : i32
    return %c0_i32, %c0_i32_0 : i32, i32
  }
  func.func @transform_4(%arg0: i32) -> (i32, i32) {
    %c0_i32 = arith.constant 0 : i32
    %c0_i32_0 = arith.constant 0 : i32
    %c0_i32_1 = arith.constant 0 : i32
    return %c0_i32, %c0_i32_0 : i32, i32
  }
  func.func @transform_5(%arg0: i32) -> (i32, i32) {
    %c0_i32 = arith.constant 0 : i32
    %c0_i32_0 = arith.constant 0 : i32
    %c0_i32_1 = arith.constant 0 : i32
    return %c0_i32, %c0_i32_0 : i32, i32
  }
  func.func @transform_6(%arg0: i32) -> (i32, i32) {
    %c0_i32 = arith.constant 0 : i32
    %c0_i32_0 = arith.constant 0 : i32
    return %c0_i32, %arg0 : i32, i32
  }
}

module attributes {stable_mosaic.version = 11 : i64} {
  func.func @_coembed_kernel(%arg0: i32, %arg1: memref<16x256xf32, #tpu.memory_space<vmem>>, %arg2: memref<16x128xf32, #tpu.memory_space<vmem>>, %arg3: memref<256x128xbf16, #tpu.memory_space<vmem>>, %arg4: memref<1x128xf32, #tpu.memory_space<vmem>>, %arg5: memref<128x128xbf16, #tpu.memory_space<vmem>>, %arg6: memref<1x128xf32, #tpu.memory_space<vmem>>, %arg7: memref<1x16xf32, #tpu.memory_space<vmem>>) attributes {dimension_semantics = [#tpu.dimension_semantics<parallel>], iteration_bounds = array<i64: 1>, scalar_prefetch = 0 : i64, scratch_operands = 0 : i64, tpu.core_type = #tpu.core_type<tc>, window_params = [{transform_indices = @transform_0, window_bounds = array<i64: 16, 256>}, {transform_indices = @transform_1, window_bounds = array<i64: 16, 128>}, {pipeline_mode = #tpu.pipeline_mode<synchronous>, transform_indices = @transform_2, window_bounds = array<i64: 256, 128>}, {pipeline_mode = #tpu.pipeline_mode<synchronous>, transform_indices = @transform_3, window_bounds = array<i64: 1, 128>}, {pipeline_mode = #tpu.pipeline_mode<synchronous>, transform_indices = @transform_4, window_bounds = array<i64: 128, 128>}, {pipeline_mode = #tpu.pipeline_mode<synchronous>, transform_indices = @transform_5, window_bounds = array<i64: 1, 128>}, {transform_indices = @transform_6, window_bounds = array<i64: 1, 16>}]} {
    %c0 = arith.constant 0 : index
    %c0_0 = arith.constant 0 : index
    %0 = vector.load %arg1[%c0, %c0_0] : memref<16x256xf32, #tpu.memory_space<vmem>>, vector<16x256xf32>
    %c0_1 = arith.constant 0 : index
    %c0_2 = arith.constant 0 : index
    %1 = vector.load %arg2[%c0_1, %c0_2] : memref<16x128xf32, #tpu.memory_space<vmem>>, vector<16x128xf32>
    %2 = arith.truncf %0 : vector<16x256xf32> to vector<16x256xbf16>
    %3 = arith.truncf %1 : vector<16x128xf32> to vector<16x128xbf16>
    %c0_3 = arith.constant 0 : index
    %c0_4 = arith.constant 0 : index
    %4 = vector.load %arg3[%c0_3, %c0_4] : memref<256x128xbf16, #tpu.memory_space<vmem>>, vector<256x128xbf16>
    %cst = arith.constant dense<0.000000e+00> : vector<16x128xf32>
    %5 = tpu.matmul %2, %4, %cst {dimension_numbers = #tpu.dot_dimension_numbers<[1], [0], [0], [1], [0, 0, 1, 1], [], []>} : vector<16x256xbf16>, vector<256x128xbf16>, vector<16x128xf32> -> vector<16x128xf32>
    %c0_5 = arith.constant 0 : index
    %c0_6 = arith.constant 0 : index
    %6 = vector.load %arg4[%c0_5, %c0_6] : memref<1x128xf32, #tpu.memory_space<vmem>>, vector<1x128xf32>
    %7 = vector.broadcast %6 : vector<1x128xf32> to vector<16x128xf32>
    %8 = arith.addf %5, %7 : vector<16x128xf32>
    %cst_7 = arith.constant 0.000000e+00 : f32
    %9 = vector.broadcast %cst_7 : f32 to vector<16x128xf32>
    %10 = arith.maximumf %8, %9 : vector<16x128xf32>
    %c0_8 = arith.constant 0 : index
    %c0_9 = arith.constant 0 : index
    %11 = vector.load %arg5[%c0_8, %c0_9] : memref<128x128xbf16, #tpu.memory_space<vmem>>, vector<128x128xbf16>
    %cst_10 = arith.constant dense<0.000000e+00> : vector<16x128xf32>
    %12 = tpu.matmul %3, %11, %cst_10 {dimension_numbers = #tpu.dot_dimension_numbers<[1], [0], [0], [1], [0, 0, 1, 1], [], []>} : vector<16x128xbf16>, vector<128x128xbf16>, vector<16x128xf32> -> vector<16x128xf32>
    %c0_11 = arith.constant 0 : index
    %c0_12 = arith.constant 0 : index
    %13 = vector.load %arg6[%c0_11, %c0_12] : memref<1x128xf32, #tpu.memory_space<vmem>>, vector<1x128xf32>
    %14 = vector.broadcast %13 : vector<1x128xf32> to vector<16x128xf32>
    %15 = arith.addf %12, %14 : vector<16x128xf32>
    %cst_13 = arith.constant 0.000000e+00 : f32
    %16 = vector.broadcast %cst_13 : f32 to vector<16x128xf32>
    %17 = arith.maximumf %15, %16 : vector<16x128xf32>
    %18 = arith.mulf %10, %17 : vector<16x128xf32>
    %cst_14 = arith.constant dense<0.000000e+00> : vector<16xf32>
    %19 = vector.multi_reduction <add>, %18, %cst_14 [1] : vector<16x128xf32> to vector<16xf32>
    %20 = vector.shape_cast %19 : vector<16xf32> to vector<16x1xf32>
    %21 = arith.mulf %10, %10 : vector<16x128xf32>
    %cst_15 = arith.constant dense<0.000000e+00> : vector<16xf32>
    %22 = vector.multi_reduction <add>, %21, %cst_15 [1] : vector<16x128xf32> to vector<16xf32>
    %23 = vector.shape_cast %22 : vector<16xf32> to vector<16x1xf32>
    %24 = arith.mulf %17, %17 : vector<16x128xf32>
    %cst_16 = arith.constant dense<0.000000e+00> : vector<16xf32>
    %25 = vector.multi_reduction <add>, %24, %cst_16 [1] : vector<16x128xf32> to vector<16xf32>
    %26 = vector.shape_cast %25 : vector<16xf32> to vector<16x1xf32>
    %cst_17 = arith.constant 1.000000e-16 : f32
    %27 = vector.broadcast %cst_17 : f32 to vector<16x1xf32>
    %28 = arith.maximumf %23, %27 : vector<16x1xf32>
    %cst_18 = arith.constant 1.000000e-16 : f32
    %29 = vector.broadcast %cst_18 : f32 to vector<16x1xf32>
    %30 = arith.maximumf %26, %29 : vector<16x1xf32>
    %31 = arith.mulf %28, %30 : vector<16x1xf32>
    %32 = math.rsqrt %31 : vector<16x1xf32>
    %33 = arith.mulf %20, %32 : vector<16x1xf32>
    %34 = arith.negf %33 : vector<16x1xf32>
    %35 = math.exp %34 : vector<16x1xf32>
    %cst_19 = arith.constant 1.000000e+00 : f32
    %36 = vector.broadcast %cst_19 : f32 to vector<16x1xf32>
    %37 = arith.addf %36, %35 : vector<16x1xf32>
    %38 = arith.divf %36, %37 : vector<16x1xf32>
    %39 = tpu.transpose %38, [1, 0] : vector<16x1xf32> -> vector<1x16xf32>
    %c0_20 = arith.constant 0 : index
    %c0_21 = arith.constant 0 : index
    %40 = vector.load %arg7[%c0_20, %c0_21] : memref<1x16xf32, #tpu.memory_space<vmem>>, vector<1x16xf32>
    tpu.vector_store %arg7[%c0_20, %c0_21], %39 {strides = array<i32>} : memref<1x16xf32, #tpu.memory_space<vmem>>, vector<1x16xf32>,
    return
  }
  func.func @transform_0(%arg0: i32) -> (i32, i32) {
    %c0_i32 = arith.constant 0 : i32
    %c0_i32_0 = arith.constant 0 : i32
    return %arg0, %c0_i32 : i32, i32
  }
  func.func @transform_1(%arg0: i32) -> (i32, i32) {
    %c0_i32 = arith.constant 0 : i32
    %c0_i32_0 = arith.constant 0 : i32
    return %arg0, %c0_i32 : i32, i32
  }
  func.func @transform_2(%arg0: i32) -> (i32, i32) {
    %c0_i32 = arith.constant 0 : i32
    %c0_i32_0 = arith.constant 0 : i32
    %c0_i32_1 = arith.constant 0 : i32
    return %c0_i32, %c0_i32_0 : i32, i32
  }
  func.func @transform_3(%arg0: i32) -> (i32, i32) {
    %c0_i32 = arith.constant 0 : i32
    %c0_i32_0 = arith.constant 0 : i32
    %c0_i32_1 = arith.constant 0 : i32
    return %c0_i32, %c0_i32_0 : i32, i32
  }
  func.func @transform_4(%arg0: i32) -> (i32, i32) {
    %c0_i32 = arith.constant 0 : i32
    %c0_i32_0 = arith.constant 0 : i32
    %c0_i32_1 = arith.constant 0 : i32
    return %c0_i32, %c0_i32_0 : i32, i32
  }
  func.func @transform_5(%arg0: i32) -> (i32, i32) {
    %c0_i32 = arith.constant 0 : i32
    %c0_i32_0 = arith.constant 0 : i32
    %c0_i32_1 = arith.constant 0 : i32
    return %c0_i32, %c0_i32_0 : i32, i32
  }
  func.func @transform_6(%arg0: i32) -> (i32, i32) {
    %c0_i32 = arith.constant 0 : i32
    %c0_i32_0 = arith.constant 0 : i32
    return %c0_i32, %arg0 : i32, i32
  }
}

</mosaic_0001>

<bundles_post_ra>
// kernel: tpu_custom_call.1
= control target key start
LH: loop header
LB: loop body
LE: loop exit
PB: predicated region body
PF: predicated region fallthrough
CT: control target
= control target key end

     0   :  { %11 = vsyncpa [#allocation3], 0  ;;  %s841_s0 = inlined_call_operand.hbm [shape: f32[16,256], index: 0, kind: input, shape index: {}]   ;;  %s842_s1 = inlined_call_operand.hbm [shape: f32[16,128], index: 1, kind: input, shape index: {}]   ;;  %s843_s2 = inlined_call_operand.hbm [shape: bf16[256,128], index: 2, kind: input, shape index: {}]   ;;  %s844_s3 = inlined_call_operand.vmem [shape: f32[1,128], index: 3, kind: input, shape index: {}]   ;;  %s845_s4 = inlined_call_operand.hbm [shape: bf16[128,128], index: 4, kind: input, shape index: {}]   ;;  %s846_s5 = inlined_call_operand.vmem [shape: f32[1,128], index: 5, kind: input, shape index: {}]   ;;  %s847_s6 = inlined_call_operand.hbm [shape: f32[1,16], index: 6, kind: output, shape index: {}]  }
   0x1   :  { %12 = vsyncpa [#allocation6], 0 }
   0x2   :  { %13 = vsyncpa [#allocation9], 0 }
   0x3   :  { %14 = vsyncpa [#allocation4], 0  ;;  %s718_s21 = smov [#allocation5]   ;;  %s600_s25 = scalar_lea.hbm %s842_s1, 256 }
   0x4   :  { %s32_s22 = sshll.u32 %s718_s21, 4  ;;  %p601_p0 = scmp.ne.s32.totalorder %s842_s1, %s600_s25  ;;  %s33_s22 = int_to_ptr.vmem [resolvable:$true] %s32_s22 }
   0x5   :  { %p604_p1 = scmp.lt.u32.totalorder %s600_s25, %s842_s1 }
   0x7   :  { %p606_p2 = pnand %p604_p1, %p601_p0 }
   0x9   :  { %609 = shalt.err (!%p606_p2)
}
   0xa   :  { %s610_s30 = scalar_lea.vmem %s33_s22, 256  ;;  %p615_p4 = scmp.lt.s32.totalorder %s33_s22, %s33_s22 }
   0xb   :  { %p611_p3 = scmp.ne.s32.totalorder %s33_s22, %s610_s30  ;;  %p616_p5 = scmp.lt.s32.totalorder %s610_s30, %s610_s30 }
   0xd   :  { %p617_p6 = por %p616_p5, %p615_p4 }
   0xf   :  { %p618_p7 = pnand %p617_p6, %p611_p3 }
  0x11   :  { %621 = shalt.err (!%p618_p7)
}
  0x12   :  { %s719_s7 = smov 128   ;;  %s720_s8 = smov 8  }
  0x13   :  { %38 = dma.hbm_to_vmem [thread:$0]  %s842_s1, 256, %s33_s22, [#allocation6], %s719_s7, %s719_s7, %s720_s8  }
  0x14   :  { %s721_s11 = smov [#allocation2]   ;;  %s622_s15 = scalar_lea.hbm %s841_s0, 512 }
  0x15   :  { %s20_s12 = sshll.u32 %s721_s11, 4  ;;  %p623_p8 = scmp.ne.s32.totalorder %s841_s0, %s622_s15  ;;  %s21_s12 = int_to_ptr.vmem [resolvable:$true] %s20_s12 }
  0x16   :  { %p626_p9 = scmp.lt.u32.totalorder %s622_s15, %s841_s0 }
  0x18   :  { %p628_p10 = pnand %p626_p9, %p623_p8 }
  0x1a   :  { %631 = shalt.err (!%p628_p10)
}
  0x1b   :  { %s632_s20 = scalar_lea.vmem %s21_s12, 512  ;;  %p637_p12 = scmp.lt.s32.totalorder %s21_s12, %s21_s12 }
  0x1c   :  { %p633_p11 = scmp.ne.s32.totalorder %s21_s12, %s632_s20  ;;  %p638_p13 = scmp.lt.s32.totalorder %s632_s20, %s632_s20 }
  0x1e   :  { %p639_p0 = por %p638_p13, %p637_p12 }
  0x20   :  { %p640_p1 = pnand %p639_p0, %p633_p11 }
  0x22   :  { %643 = shalt.err (!%p640_p1)
}
  0x23   :  { %s722_s1 = smov 256   ;;  %s723_s21 = smov 16  }
  0x24   :  { %26 = dma.hbm_to_vmem [thread:$0]  %s841_s0, 512, %s21_s12, [#allocation3], %s722_s1, %s722_s1, %s723_s21  }
  0x25   :  { %s724_s24 = smov [#allocation7]   ;;  %s644_s28 = scalar_lea.hbm %s843_s2, 2048 }
  0x26   :  { %s44_s25 = sshll.u32 %s724_s24, 4  ;;  %p645_p2 = scmp.ne.s32.totalorder %s843_s2, %s644_s28  ;;  %s45_s25 = int_to_ptr.vmem [resolvable:$true] %s44_s25 }
  0x27   :  { %p648_p3 = scmp.lt.u32.totalorder %s644_s28, %s843_s2 }
  0x29   :  { %p650_p4 = pnand %p648_p3, %p645_p2 }
  0x2b   :  { %653 = shalt.err (!%p650_p4)
}
  0x2c   :  { %s654_s9 = scalar_lea.vmem %s45_s25, 2048  ;;  %p659_p6 = scmp.lt.s32.totalorder %s45_s25, %s45_s25 }
  0x2d   :  { %p655_p5 = scmp.ne.s32.totalorder %s45_s25, %s654_s9  ;;  %p660_p7 = scmp.lt.s32.totalorder %s654_s9, %s654_s9 }
  0x2f   :  { %p661_p8 = por %p660_p7, %p659_p6 }
  0x31   :  { %p662_p9 = pnand %p661_p8, %p655_p5 }
  0x33   :  { %665 = shalt.err (!%p662_p9)
}
  0x34   :  { %s725_s0 = smov 64   ;;  %s726_s10 = smov 4  }
  0x35   :  { %50 = dma.hbm_to_vmem [thread:$0]  %s843_s2, 2048, %s45_s25, [#allocation6], %s725_s0, %s725_s0, %s726_s10  }
  0x36   :  { %s727_s13 = smov [#allocation8]   ;;  %s666_s17 = scalar_lea.hbm %s845_s4, 1024 }
  0x37   :  { %s58_s14 = sshll.u32 %s727_s13, 4  ;;  %p667_p10 = scmp.ne.s32.totalorder %s845_s4, %s666_s17  ;;  %s59_s14 = int_to_ptr.vmem [resolvable:$true] %s58_s14 }
  0x38   :  { %p670_p11 = scmp.lt.u32.totalorder %s666_s17, %s845_s4 }
  0x3a   :  { %p672_p12 = pnand %p670_p11, %p667_p10 }
  0x3c   :  { %675 = shalt.err (!%p672_p12)
}
  0x3d   :  { %s676_s21 = scalar_lea.vmem %s59_s14, 1024  ;;  %p681_p0 = scmp.lt.s32.totalorder %s59_s14, %s59_s14 }
  0x3e   :  { %p677_p13 = scmp.ne.s32.totalorder %s59_s14, %s676_s21  ;;  %p682_p1 = scmp.lt.s32.totalorder %s676_s21, %s676_s21 }
  0x40   :  { %p683_p2 = por %p682_p1, %p681_p0 }
  0x42   :  { %p684_p3 = pnand %p683_p2, %p677_p13 }
  0x44   :  { %687 = shalt.err (!%p684_p3)
}
  0x45   :  { %64 = dma.hbm_to_vmem [thread:$0]  %s845_s4, 1024, %s59_s14, [#allocation9], %s725_s0, %s725_s0, %s726_s10  }
  0x46   :  { %710 = dma.done.wait [#allocation3], 512  }
  0x47   :  { %711 = vsyncadd [#allocation3], 4294966784 }
  0x48   :  { %712 = dma.done.wait [#allocation6], 2304  }
  0x49   :  { %713 = vsyncadd [#allocation6], 4294964992 }
  0x4a   :  { %714 = dma.done.wait [#allocation9], 1024  }
  0x4b   :  { %715 = vsyncadd [#allocation9], 4294966272  ;;  %v728_v0 = vmov 0.0   ;;  %vm729_vm0 = vmmov 0   ;;  %v564_v1 = vld [vmem:[#allocation7 + $0x40] sm:$0xff]   ;;  %v566_v3 = vld [vmem:[#allocation7 + $0x48] sm:$0xff]  }
  0x4c   :  { %531 = vmatprep.subr.bf16.mxu1 %v728_v0  ;;  %547 = vmatprep.mubr.msk.bf16.mxu1 %vm729_vm0, %v728_v0  ;;  %v565_v2 = vld [vmem:[#allocation7] sm:$0xff]   ;;  %v568_v5 = vld [vmem:[#allocation7 + $0x8] sm:$0xff]   ;;  %v569_v6 = vld [vmem:[#allocation7 + $0x50] sm:$0xff]   ;;  %vm453_vm1 = vcmask 122880  }
  0x4d   :  { %500 = vmatprep.subr.bf16.mxu0 %v564_v1  ;;  %v567_v4 = vld [vmem:[#allocation8] sm:$0xff]   ;;  %v570_v7 = vld [vmem:[#allocation8 + $0x8] sm:$0xff]   ;;  %v571_v8 = vld [vmem:[#allocation7 + $0x10] sm:$0xff]  }
  0x4e   :  { %501 = vmatpush3.bf16.msra.mxu0 %v565_v2  ;;  %532 = vmatpush3.bf16.msra.mxu1 %v567_v4  ;;  %v572_v9 = vld [vmem:[#allocation7 + $0x58] sm:$0xff]   ;;  %v573_v10 = vld [vmem:[#allocation8 + $0x10] sm:$0xff]   ;;  %v575_v12 = vld [vmem:[#allocation7 + $0x60] sm:$0xff]  }
  0x4f   :  { %502 = vmatprep.subr.bf16.mxu0 %v566_v3  ;;  %533 = vmatprep.subr.bf16.mxu1 %v728_v0  ;;  %v574_v11 = vld [vmem:[#allocation7 + $0x18] sm:$0xff]   ;;  %v577_v14 = vld [vmem:[#allocation7 + $0x20] sm:$0xff]   ;;  %v578_v15 = vld [vmem:[#allocation7 + $0x68] sm:$0xff]  }
  0x50   :  { %v576_v13 = vld [vmem:[#allocation8 + $0x18] sm:$0xff]   ;;  %v579_v16 = vld [vmem:[#allocation8 + $0x20] sm:$0xff]   ;;  %v580_v17 = vld [vmem:[#allocation7 + $0x28] sm:$0xff]  }
  0x51   :  { %v581_v18 = vld [vmem:[#allocation7 + $0x70] sm:$0xff]   ;;  %v582_v19 = vld [vmem:[#allocation8 + $0x28] sm:$0xff]   ;;  %v81_v21 = vld [vmem:[#allocation2 + $0x8] sm:$0xff] }
  0x52   :  { %503 = vmatpush3.bf16.msra.mxu0 %v568_v5  ;;  %534 = vmatpush3.bf16.msra.mxu1 %v570_v7  ;;  %v583_v20 = vld [vmem:[#allocation7 + $0x30] sm:$0xff]   ;;  %v83_v22 = vld [vmem:[#allocation2 + $0x18] sm:$0xff]  ;;  %v584_v23 = vld [vmem:[#allocation7 + $0x78] sm:$0xff]  }
  0x53   :  { %504 = vmatprep.subr.bf16.mxu0 %v569_v6  ;;  %535 = vmatprep.subr.bf16.mxu1 %v728_v0  ;;  %v87_v24 = vpack.c.bf16 %v83_v22, %v81_v21  ;;  %v585_v25 = vld [vmem:[#allocation8 + $0x30] sm:$0xff]   ;;  %v586_v26 = vld [vmem:[#allocation7 + $0x38] sm:$0xff]   ;;  %v82_v28 = vld [vmem:[#allocation2 + $0x10] sm:$0xff] }
  0x54   :  { %v80_v27 = vld [vmem:[#allocation2] sm:$0xff]  ;;  %v587_v29 = vld [vmem:[#allocation8 + $0x38] sm:$0xff]  }
  0x55   :  { %256 = vmatprep.mubr.bf16.mxu0 %v87_v24  ;;  %v84_v30 = vld [vmem:[#allocation5] sm:$0xff]  ;;  %v85_v31 = vld [vmem:[#allocation5 + $0x8] sm:$0xff]  ;;  %v86_v32 = vpack.c.bf16 %v82_v28, %v80_v27 }
  0x56   :  { %505 = vmatpush3.bf16.msra.mxu0 %v571_v8  ;;  %536 = vmatpush3.bf16.msra.mxu1 %v573_v10  ;;  %v88_v33 = vpack.c.bf16 %v85_v31, %v84_v30  ;;  %v489_v35 = vld [vmem:[%s846_s5] ss:$0 sm:$0xff] }
  0x57   :  { %506 = vmatprep.subr.bf16.mxu0 %v572_v9  ;;  %537 = vmatprep.subr.bf16.mxu1 %v728_v0  ;;  %v472_v37 = vld [vmem:[%s844_s3] ss:$0 sm:$0xff]  ;;  %s730_s3 = smov [#allocation10]  }
  0x58   :  { %s461_s5 = sshll.u32 %s730_s3, 4  ;;  %s462_s5 = int_to_ptr.vmem [resolvable:$true] %s461_s5 }
  0x59   :  { %s688_s26 = scalar_lea.vmem %s462_s5, 16  ;;  %s692_s27 = scalar_lea.vmem %s462_s5, 32 }
  0x5a   :  { %507 = vmatpush3.bf16.msra.mxu0 %v574_v11  ;;  %538 = vmatpush3.bf16.msra.mxu1 %v576_v13  ;;  %p689_p4 = scmp.ne.s32.totalorder %s462_s5, %s688_s26  ;;  %p693_p5 = scmp.lt.s32.totalorder %s462_s5, %s462_s5 }
  0x5b   :  { %508 = vmatprep.subr.bf16.mxu0 %v575_v12  ;;  %539 = vmatprep.subr.bf16.mxu1 %v728_v0  ;;  %p694_p6 = scmp.lt.s32.totalorder %s692_s27, %s688_s26 }
  0x5d   :  { %p695_p7 = por %p694_p6, %p693_p5 }
  0x5e   :  { %509 = vmatpush3.bf16.msra.mxu0 %v577_v14  ;;  %540 = vmatpush3.bf16.msra.mxu1 %v579_v16 }
  0x5f   :  { %510 = vmatprep.subr.bf16.mxu0 %v578_v15  ;;  %541 = vmatprep.subr.bf16.mxu1 %v728_v0  ;;  %p696_p8 = pnand %p695_p7, %p689_p4 }
  0x62   :  { %511 = vmatpush3.bf16.msra.mxu0 %v580_v17  ;;  %542 = vmatpush3.bf16.msra.mxu1 %v582_v19 }
  0x63   :  { %512 = vmatprep.subr.bf16.mxu0 %v581_v18  ;;  %543 = vmatprep.subr.bf16.mxu1 %v728_v0 }
  0x66   :  { %513 = vmatpush3.bf16.msra.mxu0 %v583_v20  ;;  %544 = vmatpush3.bf16.msra.mxu1 %v585_v25 }
  0x67   :  { %514 = vmatprep.subr.bf16.mxu0 %v584_v23  ;;  %545 = vmatprep.subr.bf16.mxu1 %v728_v0 }
  0x6a   :  { %515 = vmatpush3.bf16.msra.mxu0 %v586_v26  ;;  %546 = vmatpush3.bf16.msra.mxu1 %v587_v29 }
  0x6d   :  { %257 = vmatmul.mubr.bf16.vlgmr.msra.gmra.mrb[0].mxu0 %v86_v32  ;;  %548 = vmatmul.mubr.bf16.vlgmr.msra.gmra.mrb[0].mxu1 %v88_v33 }
 0x140   :  { %v516_v34 = vpop.f32.mrb[0].mxu0  ;;  %v372_v40 = vpop.f32.mrb[0].mxu1 }
 0x141   :  { %v517_v36 = vpop.f32.mrb[1].mxu0  ;;  %v373_v42 = vadd.f32 %v489_v35, %v372_v40  ;;  %v549_v43 = vpop.f32.mrb[1].mxu1 }
 0x142   :  { %v518_v38 = vadd.f32 %v517_v36, %v516_v34  ;;  %v519_v39 = vpop.f32.mrb[2].mxu0  ;;  %v375_v45 = vpop.f32.mrb[2].mxu1 }
 0x143   :  { %v520_v41 = vpop.f32.mrb[3].mxu0  ;;  %v379_v47 = vmax.f32 %v373_v42, 0.0  ;;  %v376_v48 = vadd.f32 %v489_v35, %v375_v45  ;;  %v550_v49 = vpop.f32.mrb[3].mxu1 }
 0x144   :  { %v521_v44 = vadd.f32 %v520_v41, %v519_v39  ;;  %v259_v46 = vadd.f32 %v518_v38, %v472_v37 }
 0x145   :  { %v380_v52 = vmax.f32 %v376_v48, 0.0  ;;  %v393_v57 = vmul.f32 %v379_v47, %v379_v47 }
 0x146   :  { %v265_v50 = vmax.f32 %v259_v46, 0.0  ;;  %v262_v51 = vadd.f32 %v521_v44, %v472_v37 }
 0x147   :  { %v394_v59 = vmul.f32 %v380_v52, %v380_v52 }
 0x148   :  { %v387_v53 = vmul.f32 %v265_v50, %v265_v50  ;;  %v266_v54 = vmax.f32 %v262_v51, 0.0  ;;  %v381_v55 = vmul.f32 %v379_v47, %v265_v50 }
 0x14a   :  { %389 = vadd.xlane.f32.xlu0 %v387_v53  ;;  %v388_v56 = vmul.f32 %v266_v54, %v266_v54  ;;  %v382_v58 = vmul.f32 %v380_v52, %v266_v54 }
 0x14c   :  { %391 = vadd.xlane.f32.xlu1 %v388_v56 }
 0x14e   :  { %395 = vadd.xlane.f32.xlu0 %v393_v57 }
 0x150   :  { %397 = vadd.xlane.f32.xlu1 %v394_v59 }
 0x152   :  { %383 = vadd.xlane.f32.xlu0 %v381_v55 }
 0x154   :  { %385 = vadd.xlane.f32.xlu1 %v382_v58 }
 0x1d7   :  { %v390_v60 = vpop.xlane.xlu0 %389 }
 0x1d8   :  { %v399_v63 = vmax.f32 %v390_v60, 1e-16 }
 0x1d9   :  { %v392_v61 = vpop.xlane.xlu1 %391 }
 0x1da   :  { %v400_v2 = vmax.f32 %v392_v61, 1e-16 }
 0x1db   :  { %v396_v62 = vpop.xlane.xlu0 %395 }
 0x1dc   :  { %v401_v0 = vmax.f32 %v396_v62, 1e-16 }
 0x1dd   :  { %v398_v1 = vpop.xlane.xlu1 %397 }
 0x1de   :  { %v403_v3 = vmul.f32 %v401_v0, %v399_v63  ;;  %v402_v4 = vmax.f32 %v398_v1, 1e-16 }
 0x1df   :  { %v384_v7 = vpop.xlane.xlu0 %383 }
 0x1e0   :  { %588 = vrsqrt.f32 %v403_v3  ;;  %v404_v5 = vmul.f32 %v402_v4, %v400_v2 }
 0x1e1   :  { %v386_v10 = vpop.xlane.xlu1 %385 }
 0x1e2   :  { %590 = vrsqrt.f32 %v404_v5 }
 0x1ea   :  { %v589_v6 = vpop.eup %588 }
 0x1eb   :  { %v407_v8 = vmul.f32 %v589_v6, %v384_v7 }
 0x1ec   :  { %v591_v9 = vpop.eup %590 }
 0x1ed   :  { %v498_v11 = vmul.f32 -1.442695, %v407_v8  ;;  %v408_v12 = vmul.f32 %v591_v9, %v386_v10 }
 0x1ef   :  { %592 = vpow2.f32 %v498_v11  ;;  %v499_v13 = vmul.f32 -1.442695, %v408_v12 }
 0x1f1   :  { %594 = vpow2.f32 %v499_v13 }
 0x1f9   :  { %v593_v14 = vpop.eup %592 }
 0x1fa   :  { %v415_v15 = vadd.f32 1.0, %v593_v14 }
 0x1fb   :  { %v595_v16 = vpop.eup %594 }
 0x1fc   :  { %596 = vrcp.f32 %v415_v15  ;;  %v416_v17 = vadd.f32 1.0, %v595_v16 }
 0x1fe   :  { %598 = vrcp.f32 %v416_v17 }
 0x206   :  { %v597_v18 = vpop.eup %596 }
 0x207   :  { %421 = vxpose.xlu0.b32.start [1/2] (short) (narrow) %v597_v18, 8 }
 0x208   :  { %v599_v19 = vpop.eup %598 }
 0x20b   :  { %422 = vxpose.xlu0.b32.end [2/2] (short) (narrow) %v599_v19, 8 }
 0x287   :  { %v437_v20 = vpop.trf.xlu0 }
 0x288   :  { %454 = vst.msk [vmem:[#allocation10] sm:$0x1] %vm453_vm1, %v437_v20 }
 0x289   :  { %699 = shalt.err (!%p696_p8)
}
 0x28a   :  { %s700_s30 = scalar_lea.hbm %s847_s6, 16 }
 0x28b   :  { %p701_p9 = scmp.ne.s32.totalorder %s847_s6, %s700_s30  ;;  %p704_p10 = scmp.lt.u32.totalorder %s700_s30, %s847_s6 }
 0x28d   :  { %p706_p11 = pnand %p704_p10, %p701_p9 }
 0x28f   :  { %709 = shalt.err (!%p706_p11)
}
 0x290   :  { %464 = dma.vmem_to_hbm [thread:$0]  %s462_s5, 16, %s847_s6, [#allocation4]  }
 0x291   :  { %716 = dma.done.wait [#allocation4], 16  }
 0x292   :  { %717 = vsyncadd [#allocation4], 4294967280 }
 0x293   :  { %468 = vsyncpa [#allocation3], 1 }
 0x294   :  { %469 = vsyncpa [#allocation6], 1 }
 0x295   :  { %470 = vsyncpa [#allocation9], 1 }
 0x296   :  { %471 = vsyncpa [#allocation4], 1 }

// kernel: tpu_custom_call.1
= control target key start
LH: loop header
LB: loop body
LE: loop exit
PB: predicated region body
PF: predicated region fallthrough
CT: control target
= control target key end

     0   :  { %11 = vsyncpa [#allocation3], 0  ;;  %s841_s0 = inlined_call_operand.hbm [shape: f32[16,256], index: 0, kind: input, shape index: {}]   ;;  %s842_s1 = inlined_call_operand.hbm [shape: f32[16,128], index: 1, kind: input, shape index: {}]   ;;  %s843_s2 = inlined_call_operand.hbm [shape: bf16[256,128], index: 2, kind: input, shape index: {}]   ;;  %s844_s3 = inlined_call_operand.vmem [shape: f32[1,128], index: 3, kind: input, shape index: {}]   ;;  %s845_s4 = inlined_call_operand.hbm [shape: bf16[128,128], index: 4, kind: input, shape index: {}]   ;;  %s846_s5 = inlined_call_operand.vmem [shape: f32[1,128], index: 5, kind: input, shape index: {}]   ;;  %s847_s6 = inlined_call_operand.hbm [shape: f32[1,16], index: 6, kind: output, shape index: {}]  }
   0x1   :  { %12 = vsyncpa [#allocation6], 0 }
   0x2   :  { %13 = vsyncpa [#allocation9], 0 }
   0x3   :  { %14 = vsyncpa [#allocation4], 0  ;;  %s718_s21 = smov [#allocation5]   ;;  %s600_s25 = scalar_lea.hbm %s842_s1, 256 }
   0x4   :  { %s32_s22 = sshll.u32 %s718_s21, 4  ;;  %p601_p0 = scmp.ne.s32.totalorder %s842_s1, %s600_s25  ;;  %s33_s22 = int_to_ptr.vmem [resolvable:$true] %s32_s22 }
   0x5   :  { %p604_p1 = scmp.lt.u32.totalorder %s600_s25, %s842_s1 }
   0x7   :  { %p606_p2 = pnand %p604_p1, %p601_p0 }
   0x9   :  { %609 = shalt.err (!%p606_p2)
}
   0xa   :  { %s610_s30 = scalar_lea.vmem %s33_s22, 256  ;;  %p615_p4 = scmp.lt.s32.totalorder %s33_s22, %s33_s22 }
   0xb   :  { %p611_p3 = scmp.ne.s32.totalorder %s33_s22, %s610_s30  ;;  %p616_p5 = scmp.lt.s32.totalorder %s610_s30, %s610_s30 }
   0xd   :  { %p617_p6 = por %p616_p5, %p615_p4 }
   0xf   :  { %p618_p7 = pnand %p617_p6, %p611_p3 }
  0x11   :  { %621 = shalt.err (!%p618_p7)
}
  0x12   :  { %s719_s7 = smov 128   ;;  %s720_s8 = smov 8  }
  0x13   :  { %38 = dma.hbm_to_vmem [thread:$0]  %s842_s1, 256, %s33_s22, [#allocation6], %s719_s7, %s719_s7, %s720_s8  }
  0x14   :  { %s721_s11 = smov [#allocation2]   ;;  %s622_s15 = scalar_lea.hbm %s841_s0, 512 }
  0x15   :  { %s20_s12 = sshll.u32 %s721_s11, 4  ;;  %p623_p8 = scmp.ne.s32.totalorder %s841_s0, %s622_s15  ;;  %s21_s12 = int_to_ptr.vmem [resolvable:$true] %s20_s12 }
  0x16   :  { %p626_p9 = scmp.lt.u32.totalorder %s622_s15, %s841_s0 }
  0x18   :  { %p628_p10 = pnand %p626_p9, %p623_p8 }
  0x1a   :  { %631 = shalt.err (!%p628_p10)
}
  0x1b   :  { %s632_s20 = scalar_lea.vmem %s21_s12, 512  ;;  %p637_p12 = scmp.lt.s32.totalorder %s21_s12, %s21_s12 }
  0x1c   :  { %p633_p11 = scmp.ne.s32.totalorder %s21_s12, %s632_s20  ;;  %p638_p13 = scmp.lt.s32.totalorder %s632_s20, %s632_s20 }
  0x1e   :  { %p639_p0 = por %p638_p13, %p637_p12 }
  0x20   :  { %p640_p1 = pnand %p639_p0, %p633_p11 }
  0x22   :  { %643 = shalt.err (!%p640_p1)
}
  0x23   :  { %s722_s1 = smov 256   ;;  %s723_s21 = smov 16  }
  0x24   :  { %26 = dma.hbm_to_vmem [thread:$0]  %s841_s0, 512, %s21_s12, [#allocation3], %s722_s1, %s722_s1, %s723_s21  }
  0x25   :  { %s724_s24 = smov [#allocation7]   ;;  %s644_s28 = scalar_lea.hbm %s843_s2, 2048 }
  0x26   :  { %s44_s25 = sshll.u32 %s724_s24, 4  ;;  %p645_p2 = scmp.ne.s32.totalorder %s843_s2, %s644_s28  ;;  %s45_s25 = int_to_ptr.vmem [resolvable:$true] %s44_s25 }
  0x27   :  { %p648_p3 = scmp.lt.u32.totalorder %s644_s28, %s843_s2 }
  0x29   :  { %p650_p4 = pnand %p648_p3, %p645_p2 }
  0x2b   :  { %653 = shalt.err (!%p650_p4)
}
  0x2c   :  { %s654_s9 = scalar_lea.vmem %s45_s25, 2048  ;;  %p659_p6 = scmp.lt.s32.totalorder %s45_s25, %s45_s25 }
  0x2d   :  { %p655_p5 = scmp.ne.s32.totalorder %s45_s25, %s654_s9  ;;  %p660_p7 = scmp.lt.s32.totalorder %s654_s9, %s654_s9 }
  0x2f   :  { %p661_p8 = por %p660_p7, %p659_p6 }
  0x31   :  { %p662_p9 = pnand %p661_p8, %p655_p5 }
  0x33   :  { %665 = shalt.err (!%p662_p9)
}
  0x34   :  { %s725_s0 = smov 64   ;;  %s726_s10 = smov 4  }
  0x35   :  { %50 = dma.hbm_to_vmem [thread:$0]  %s843_s2, 2048, %s45_s25, [#allocation6], %s725_s0, %s725_s0, %s726_s10  }
  0x36   :  { %s727_s13 = smov [#allocation8]   ;;  %s666_s17 = scalar_lea.hbm %s845_s4, 1024 }
  0x37   :  { %s58_s14 = sshll.u32 %s727_s13, 4  ;;  %p667_p10 = scmp.ne.s32.totalorder %s845_s4, %s666_s17  ;;  %s59_s14 = int_to_ptr.vmem [resolvable:$true] %s58_s14 }
  0x38   :  { %p670_p11 = scmp.lt.u32.totalorder %s666_s17, %s845_s4 }
  0x3a   :  { %p672_p12 = pnand %p670_p11, %p667_p10 }
  0x3c   :  { %675 = shalt.err (!%p672_p12)
}
  0x3d   :  { %s676_s21 = scalar_lea.vmem %s59_s14, 1024  ;;  %p681_p0 = scmp.lt.s32.totalorder %s59_s14, %s59_s14 }
  0x3e   :  { %p677_p13 = scmp.ne.s32.totalorder %s59_s14, %s676_s21  ;;  %p682_p1 = scmp.lt.s32.totalorder %s676_s21, %s676_s21 }
  0x40   :  { %p683_p2 = por %p682_p1, %p681_p0 }
  0x42   :  { %p684_p3 = pnand %p683_p2, %p677_p13 }
  0x44   :  { %687 = shalt.err (!%p684_p3)
}
  0x45   :  { %64 = dma.hbm_to_vmem [thread:$0]  %s845_s4, 1024, %s59_s14, [#allocation9], %s725_s0, %s725_s0, %s726_s10  }
  0x46   :  { %710 = dma.done.wait [#allocation3], 512  }
  0x47   :  { %711 = vsyncadd [#allocation3], 4294966784 }
  0x48   :  { %712 = dma.done.wait [#allocation6], 2304  }
  0x49   :  { %713 = vsyncadd [#allocation6], 4294964992 }
  0x4a   :  { %714 = dma.done.wait [#allocation9], 1024  }
  0x4b   :  { %715 = vsyncadd [#allocation9], 4294966272  ;;  %v728_v0 = vmov 0.0   ;;  %vm729_vm0 = vmmov 0   ;;  %v564_v1 = vld [vmem:[#allocation7 + $0x40] sm:$0xff]   ;;  %v566_v3 = vld [vmem:[#allocation7 + $0x48] sm:$0xff]  }
  0x4c   :  { %531 = vmatprep.subr.bf16.mxu1 %v728_v0  ;;  %547 = vmatprep.mubr.msk.bf16.mxu1 %vm729_vm0, %v728_v0  ;;  %v565_v2 = vld [vmem:[#allocation7] sm:$0xff]   ;;  %v568_v5 = vld [vmem:[#allocation7 + $0x8] sm:$0xff]   ;;  %v569_v6 = vld [vmem:[#allocation7 + $0x50] sm:$0xff]   ;;  %vm453_vm1 = vcmask 122880  }
  0x4d   :  { %500 = vmatprep.subr.bf16.mxu0 %v564_v1  ;;  %v567_v4 = vld [vmem:[#allocation8] sm:$0xff]   ;;  %v570_v7 = vld [vmem:[#allocation8 + $0x8] sm:$0xff]   ;;  %v571_v8 = vld [vmem:[#allocation7 + $0x10] sm:$0xff]  }
  0x4e   :  { %501 = vmatpush3.bf16.msra.mxu0 %v565_v2  ;;  %532 = vmatpush3.bf16.msra.mxu1 %v567_v4  ;;  %v572_v9 = vld [vmem:[#allocation7 + $0x58] sm:$0xff]   ;;  %v573_v10 = vld [vmem:[#allocation8 + $0x10] sm:$0xff]   ;;  %v575_v12 = vld [vmem:[#allocation7 + $0x60] sm:$0xff]  }
  0x4f   :  { %502 = vmatprep.subr.bf16.mxu0 %v566_v3  ;;  %533 = vmatprep.subr.bf16.mxu1 %v728_v0  ;;  %v574_v11 = vld [vmem:[#allocation7 + $0x18] sm:$0xff]   ;;  %v577_v14 = vld [vmem:[#allocation7 + $0x20] sm:$0xff]   ;;  %v578_v15 = vld [vmem:[#allocation7 + $0x68] sm:$0xff]  }
  0x50   :  { %v576_v13 = vld [vmem:[#allocation8 + $0x18] sm:$0xff]   ;;  %v579_v16 = vld [vmem:[#allocation8 + $0x20] sm:$0xff]   ;;  %v580_v17 = vld [vmem:[#allocation7 + $0x28] sm:$0xff]  }
  0x51   :  { %v581_v18 = vld [vmem:[#allocation7 + $0x70] sm:$0xff]   ;;  %v582_v19 = vld [vmem:[#allocation8 + $0x28] sm:$0xff]   ;;  %v81_v21 = vld [vmem:[#allocation2 + $0x8] sm:$0xff] }
  0x52   :  { %503 = vmatpush3.bf16.msra.mxu0 %v568_v5  ;;  %534 = vmatpush3.bf16.msra.mxu1 %v570_v7  ;;  %v583_v20 = vld [vmem:[#allocation7 + $0x30] sm:$0xff]   ;;  %v83_v22 = vld [vmem:[#allocation2 + $0x18] sm:$0xff]  ;;  %v584_v23 = vld [vmem:[#allocation7 + $0x78] sm:$0xff]  }
  0x53   :  { %504 = vmatprep.subr.bf16.mxu0 %v569_v6  ;;  %535 = vmatprep.subr.bf16.mxu1 %v728_v0  ;;  %v87_v24 = vpack.c.bf16 %v83_v22, %v81_v21  ;;  %v585_v25 = vld [vmem:[#allocation8 + $0x30] sm:$0xff]   ;;  %v586_v26 = vld [vmem:[#allocation7 + $0x38] sm:$0xff]   ;;  %v82_v28 = vld [vmem:[#allocation2 + $0x10] sm:$0xff] }
  0x54   :  { %v80_v27 = vld [vmem:[#allocation2] sm:$0xff]  ;;  %v587_v29 = vld [vmem:[#allocation8 + $0x38] sm:$0xff]  }
  0x55   :  { %256 = vmatprep.mubr.bf16.mxu0 %v87_v24  ;;  %v84_v30 = vld [vmem:[#allocation5] sm:$0xff]  ;;  %v85_v31 = vld [vmem:[#allocation5 + $0x8] sm:$0xff]  ;;  %v86_v32 = vpack.c.bf16 %v82_v28, %v80_v27 }
  0x56   :  { %505 = vmatpush3.bf16.msra.mxu0 %v571_v8  ;;  %536 = vmatpush3.bf16.msra.mxu1 %v573_v10  ;;  %v88_v33 = vpack.c.bf16 %v85_v31, %v84_v30  ;;  %v489_v35 = vld [vmem:[%s846_s5] ss:$0 sm:$0xff] }
  0x57   :  { %506 = vmatprep.subr.bf16.mxu0 %v572_v9  ;;  %537 = vmatprep.subr.bf16.mxu1 %v728_v0  ;;  %v472_v37 = vld [vmem:[%s844_s3] ss:$0 sm:$0xff]  ;;  %s730_s3 = smov [#allocation10]  }
  0x58   :  { %s461_s5 = sshll.u32 %s730_s3, 4  ;;  %s462_s5 = int_to_ptr.vmem [resolvable:$true] %s461_s5 }
  0x59   :  { %s688_s26 = scalar_lea.vmem %s462_s5, 16  ;;  %s692_s27 = scalar_lea.vmem %s462_s5, 32 }
  0x5a   :  { %507 = vmatpush3.bf16.msra.mxu0 %v574_v11  ;;  %538 = vmatpush3.bf16.msra.mxu1 %v576_v13  ;;  %p689_p4 = scmp.ne.s32.totalorder %s462_s5, %s688_s26  ;;  %p693_p5 = scmp.lt.s32.totalorder %s462_s5, %s462_s5 }
  0x5b   :  { %508 = vmatprep.subr.bf16.mxu0 %v575_v12  ;;  %539 = vmatprep.subr.bf16.mxu1 %v728_v0  ;;  %p694_p6 = scmp.lt.s32.totalorder %s692_s27, %s688_s26 }
  0x5d   :  { %p695_p7 = por %p694_p6, %p693_p5 }
  0x5e   :  { %509 = vmatpush3.bf16.msra.mxu0 %v577_v14  ;;  %540 = vmatpush3.bf16.msra.mxu1 %v579_v16 }
  0x5f   :  { %510 = vmatprep.subr.bf16.mxu0 %v578_v15  ;;  %541 = vmatprep.subr.bf16.mxu1 %v728_v0  ;;  %p696_p8 = pnand %p695_p7, %p689_p4 }
  0x62   :  { %511 = vmatpush3.bf16.msra.mxu0 %v580_v17  ;;  %542 = vmatpush3.bf16.msra.mxu1 %v582_v19 }
  0x63   :  { %512 = vmatprep.subr.bf16.mxu0 %v581_v18  ;;  %543 = vmatprep.subr.bf16.mxu1 %v728_v0 }
  0x66   :  { %513 = vmatpush3.bf16.msra.mxu0 %v583_v20  ;;  %544 = vmatpush3.bf16.msra.mxu1 %v585_v25 }
  0x67   :  { %514 = vmatprep.subr.bf16.mxu0 %v584_v23  ;;  %545 = vmatprep.subr.bf16.mxu1 %v728_v0 }
  0x6a   :  { %515 = vmatpush3.bf16.msra.mxu0 %v586_v26  ;;  %546 = vmatpush3.bf16.msra.mxu1 %v587_v29 }
  0x6d   :  { %257 = vmatmul.mubr.bf16.vlgmr.msra.gmra.mrb[0].mxu0 %v86_v32  ;;  %548 = vmatmul.mubr.bf16.vlgmr.msra.gmra.mrb[0].mxu1 %v88_v33 }
 0x140   :  { %v516_v34 = vpop.f32.mrb[0].mxu0  ;;  %v372_v40 = vpop.f32.mrb[0].mxu1 }
 0x141   :  { %v517_v36 = vpop.f32.mrb[1].mxu0  ;;  %v373_v42 = vadd.f32 %v489_v35, %v372_v40  ;;  %v549_v43 = vpop.f32.mrb[1].mxu1 }
 0x142   :  { %v518_v38 = vadd.f32 %v517_v36, %v516_v34  ;;  %v519_v39 = vpop.f32.mrb[2].mxu0  ;;  %v375_v45 = vpop.f32.mrb[2].mxu1 }
 0x143   :  { %v520_v41 = vpop.f32.mrb[3].mxu0  ;;  %v379_v47 = vmax.f32 %v373_v42, 0.0  ;;  %v376_v48 = vadd.f32 %v489_v35, %v375_v45  ;;  %v550_v49 = vpop.f32.mrb[3].mxu1 }
 0x144   :  { %v521_v44 = vadd.f32 %v520_v41, %v519_v39  ;;  %v259_v46 = vadd.f32 %v518_v38, %v472_v37 }
 0x145   :  { %v380_v52 = vmax.f32 %v376_v48, 0.0  ;;  %v393_v57 = vmul.f32 %v379_v47, %v379_v47 }
 0x146   :  { %v265_v50 = vmax.f32 %v259_v46, 0.0  ;;  %v262_v51 = vadd.f32 %v521_v44, %v472_v37 }
 0x147   :  { %v394_v59 = vmul.f32 %v380_v52, %v380_v52 }
 0x148   :  { %v387_v53 = vmul.f32 %v265_v50, %v265_v50  ;;  %v266_v54 = vmax.f32 %v262_v51, 0.0  ;;  %v381_v55 = vmul.f32 %v379_v47, %v265_v50 }
 0x14a   :  { %389 = vadd.xlane.f32.xlu0 %v387_v53  ;;  %v388_v56 = vmul.f32 %v266_v54, %v266_v54  ;;  %v382_v58 = vmul.f32 %v380_v52, %v266_v54 }
 0x14c   :  { %391 = vadd.xlane.f32.xlu1 %v388_v56 }
 0x14e   :  { %395 = vadd.xlane.f32.xlu0 %v393_v57 }
 0x150   :  { %397 = vadd.xlane.f32.xlu1 %v394_v59 }
 0x152   :  { %383 = vadd.xlane.f32.xlu0 %v381_v55 }
 0x154   :  { %385 = vadd.xlane.f32.xlu1 %v382_v58 }
 0x1d7   :  { %v390_v60 = vpop.xlane.xlu0 %389 }
 0x1d8   :  { %v399_v63 = vmax.f32 %v390_v60, 1e-16 }
 0x1d9   :  { %v392_v61 = vpop.xlane.xlu1 %391 }
 0x1da   :  { %v400_v2 = vmax.f32 %v392_v61, 1e-16 }
 0x1db   :  { %v396_v62 = vpop.xlane.xlu0 %395 }
 0x1dc   :  { %v401_v0 = vmax.f32 %v396_v62, 1e-16 }
 0x1dd   :  { %v398_v1 = vpop.xlane.xlu1 %397 }
 0x1de   :  { %v403_v3 = vmul.f32 %v401_v0, %v399_v63  ;;  %v402_v4 = vmax.f32 %v398_v1, 1e-16 }
 0x1df   :  { %v384_v7 = vpop.xlane.xlu0 %383 }
 0x1e0   :  { %588 = vrsqrt.f32 %v403_v3  ;;  %v404_v5 = vmul.f32 %v402_v4, %v400_v2 }
 0x1e1   :  { %v386_v10 = vpop.xlane.xlu1 %385 }
 0x1e2   :  { %590 = vrsqrt.f32 %v404_v5 }
 0x1ea   :  { %v589_v6 = vpop.eup %588 }
 0x1eb   :  { %v407_v8 = vmul.f32 %v589_v6, %v384_v7 }
 0x1ec   :  { %v591_v9 = vpop.eup %590 }
 0x1ed   :  { %v498_v11 = vmul.f32 -1.442695, %v407_v8  ;;  %v408_v12 = vmul.f32 %v591_v9, %v386_v10 }
 0x1ef   :  { %592 = vpow2.f32 %v498_v11  ;;  %v499_v13 = vmul.f32 -1.442695, %v408_v12 }
 0x1f1   :  { %594 = vpow2.f32 %v499_v13 }
 0x1f9   :  { %v593_v14 = vpop.eup %592 }
 0x1fa   :  { %v415_v15 = vadd.f32 1.0, %v593_v14 }
 0x1fb   :  { %v595_v16 = vpop.eup %594 }
 0x1fc   :  { %596 = vrcp.f32 %v415_v15  ;;  %v416_v17 = vadd.f32 1.0, %v595_v16 }
 0x1fe   :  { %598 = vrcp.f32 %v416_v17 }
 0x206   :  { %v597_v18 = vpop.eup %596 }
 0x207   :  { %421 = vxpose.xlu0.b32.start [1/2] (short) (narrow) %v597_v18, 8 }
 0x208   :  { %v599_v19 = vpop.eup %598 }
 0x20b   :  { %422 = vxpose.xlu0.b32.end [2/2] (short) (narrow) %v599_v19, 8 }
 0x287   :  { %v437_v20 = vpop.trf.xlu0 }
 0x288   :  { %454 = vst.msk [vmem:[#allocation10] sm:$0x1] %vm453_vm1, %v437_v20 }
 0x289   :  { %699 = shalt.err (!%p696_p8)
}
 0x28a   :  { %s700_s30 = scalar_lea.hbm %s847_s6, 16 }
 0x28b   :  { %p701_p9 = scmp.ne.s32.totalorder %s847_s6, %s700_s30  ;;  %p704_p10 = scmp.lt.u32.totalorder %s700_s30, %s847_s6 }
 0x28d   :  { %p706_p11 = pnand %p704_p10, %p701_p9 }
 0x28f   :  { %709 = shalt.err (!%p706_p11)
}
 0x290   :  { %464 = dma.vmem_to_hbm [thread:$0]  %s462_s5, 16, %s847_s6, [#allocation4]  }
 0x291   :  { %716 = dma.done.wait [#allocation4], 16  }
 0x292   :  { %717 = vsyncadd [#allocation4], 4294967280 }
 0x293   :  { %468 = vsyncpa [#allocation3], 1 }
 0x294   :  { %469 = vsyncpa [#allocation6], 1 }
 0x295   :  { %470 = vsyncpa [#allocation9], 1 }
 0x296   :  { %471 = vsyncpa [#allocation4], 1 }

</bundles_post_ra>
